<compile_context>
chip_gen: v7x
topology: tpu7x:2x2x1
jax: 0.10.0
libtpu: 0.0.40
codegen_flags: <defaults>
</compile_context>

<pallas_src>
import functools

import jax
import jax.numpy as jnp
from jax.experimental import pallas as pl
from jax.experimental.pallas import tpu as pltpu


def _round_up(v, m):
    return (v + m - 1) // m * m


def _choose_tile_n(n, c, itemsize):
    # ~2 MiB per input tile buffer => 2 inputs x 2 pipeline buffers ~= 8 MiB,
    # safely inside the default scoped VMEM on v5e (16 MiB) / v6e / v7x (32 MiB).
    target_bytes = 2 * 1024 * 1024
    tile = target_bytes // max(1, c * itemsize)
    tile = max(8, (tile // 8) * 8)          # respect the (8, 128) sublane rule
    tile = min(tile, 2048)                  # cap vreg pressure / live tile size
    tile = min(tile, _round_up(n, 8))       # never bigger than the (padded) N
    return max(8, tile)


def _label_smoothing_kernel(x_ref, t_ref, loss_ref, *, confidence, smoothing, inv_c):
    # One (TILE_N, C) row tile per grid step; class axis C is the lane axis.
    x = x_ref[...].astype(jnp.float32)
    t = t_ref[...].astype(jnp.float32)

    # Numerically stable logsumexp over the class (lane) axis.
    m = jnp.max(x, axis=-1, keepdims=True)                         # (T, 1)
    s_exp = jnp.sum(jnp.exp(x - m), axis=-1, keepdims=True)        # (T, 1)
    lse = jnp.log(s_exp) + m                                       # (T, 1)

    # loss_row = confidence * (lse*sum(t) - sum(t*x))
    #          + smoothing  * (lse - sum(x)/C)
    #          = lse * sum(w) - sum(w * x),  with w = confidence*t + smoothing/C
    w = confidence * t + (smoothing * inv_c)                       # (T, C)
    s_w = jnp.sum(w, axis=-1, keepdims=True)                       # (T, 1)
    s_wx = jnp.sum(w * x, axis=-1, keepdims=True)                  # (T, 1)

    loss_ref[...] = lse * s_w - s_wx                               # (T, 1)


def label_smoothing_loss(x, target, smoothing=0.05):
    """Pallas implementation of LabelSmoothing.forward (training branch)."""
    confidence = 1.0 - smoothing
    n, c = x.shape

    itemsize = max(jnp.dtype(x.dtype).itemsize, jnp.dtype(target.dtype).itemsize)
    tile_n = _choose_tile_n(n, c, itemsize)

    # Pad the row dimension so the grid is exact; padded rows are sliced off
    # before the final mean, so they never affect the result.
    n_pad = _round_up(n, tile_n)
    if n_pad != n:
        x = jnp.pad(x, ((0, n_pad - n), (0, 0)))
        target = jnp.pad(target, ((0, n_pad - n), (0, 0)))

    grid = (n_pad // tile_n,)
    kernel = functools.partial(
        _label_smoothing_kernel,
        confidence=confidence,
        smoothing=smoothing,
        inv_c=1.0 / c,
    )

    per_row = pl.pallas_call(
        kernel,
        out_shape=jax.ShapeDtypeStruct((n_pad, 1), jnp.float32),
        grid=grid,
        in_specs=[
            pl.BlockSpec((tile_n, c), lambda i: (i, 0)),
            pl.BlockSpec((tile_n, c), lambda i: (i, 0)),
        ],
        out_specs=pl.BlockSpec((tile_n, 1), lambda i: (i, 0)),
        compiler_params=pltpu.CompilerParams(
            dimension_semantics=("parallel",),
            vmem_limit_bytes=32 * 1024 * 1024,
        ),
    )(x, target)

    # Final batch mean over the true (un-padded) rows: tiny XLA reduce.
    return jnp.mean(per_row[:n, 0])


def _reference_loss(x, target, smoothing=0.05):
    confidence = 1.0 - smoothing
    x = x.astype(jnp.float32)
    target = target.astype(jnp.float32)
    logprobs = jax.nn.log_softmax(x, axis=-1)
    nll_loss = jnp.sum(-logprobs * target, axis=-1)
    smooth_loss = -jnp.mean(logprobs, axis=-1)
    loss = confidence * nll_loss + smoothing * smooth_loss
    return jnp.mean(loss)


if __name__ == "__main__":
    # Small, module-consistent shapes: batch (seq) = 8 rows, classes = 32.
    N, C = 8, 32
    key = jax.random.PRNGKey(0)
    kx, kt = jax.random.split(key)

    x = jax.random.normal(kx, (N, C), dtype=jnp.float32)
    # Soft targets (rows sum to 1), matching the elementwise-product semantics.
    target = jax.nn.softmax(jax.random.normal(kt, (N, C), dtype=jnp.float32), axis=-1)

    loss = label_smoothing_loss(x, target, smoothing=0.05)
    loss = jax.block_until_ready(loss)

    ref = _reference_loss(x, target, smoothing=0.05)
    assert jnp.allclose(loss, ref, rtol=1e-5, atol=1e-5), (loss, ref)

    # TODO(synk): eval-mode branch (torch.nn.functional.cross_entropy with
    # integer class targets) is not implemented; only the training branch is.
    print("KERNEL_OK")
</pallas_src>

<mosaic_0001>
module attributes {stable_mosaic.version = 11 : i64} {
  func.func @_label_smoothing_kernel(%arg0: i32, %arg1: memref<8x32xf32, #tpu.memory_space<vmem>>, %arg2: memref<8x32xf32, #tpu.memory_space<vmem>>, %arg3: memref<8x1xf32, #tpu.memory_space<vmem>>) attributes {dimension_semantics = [#tpu.dimension_semantics<parallel>], iteration_bounds = array<i64: 1>, scalar_prefetch = 0 : i64, scratch_operands = 0 : i64, tpu.core_type = #tpu.core_type<tc>, window_params = [{transform_indices = @transform_0, window_bounds = array<i64: 8, 32>}, {transform_indices = @transform_1, window_bounds = array<i64: 8, 32>}, {transform_indices = @transform_2, window_bounds = array<i64: 8, 1>}]} {
    %c0 = arith.constant 0 : index
    %c0_0 = arith.constant 0 : index
    %0 = vector.load %arg1[%c0, %c0_0] : memref<8x32xf32, #tpu.memory_space<vmem>>, vector<8x32xf32>
    %c0_1 = arith.constant 0 : index
    %c0_2 = arith.constant 0 : index
    %1 = vector.load %arg2[%c0_1, %c0_2] : memref<8x32xf32, #tpu.memory_space<vmem>>, vector<8x32xf32>
    %cst = arith.constant dense<0xFF800000> : vector<8xf32>
    %2 = vector.multi_reduction <maximumf>, %0, %cst [1] : vector<8x32xf32> to vector<8xf32>
    %3 = vector.shape_cast %2 : vector<8xf32> to vector<8x1xf32>
    %4 = vector.broadcast %3 : vector<8x1xf32> to vector<8x32xf32>
    %5 = arith.subf %0, %4 : vector<8x32xf32>
    %6 = math.exp %5 : vector<8x32xf32>
    %cst_3 = arith.constant dense<0.000000e+00> : vector<8xf32>
    %7 = vector.multi_reduction <add>, %6, %cst_3 [1] : vector<8x32xf32> to vector<8xf32>
    %8 = vector.shape_cast %7 : vector<8xf32> to vector<8x1xf32>
    %9 = math.log %8 : vector<8x1xf32>
    %10 = arith.addf %9, %3 : vector<8x1xf32>
    %cst_4 = arith.constant 0.949999988 : f32
    %11 = vector.broadcast %cst_4 : f32 to vector<8x32xf32>
    %12 = arith.mulf %11, %1 : vector<8x32xf32>
    %cst_5 = arith.constant 1.562500e-03 : f32
    %13 = vector.broadcast %cst_5 : f32 to vector<8x32xf32>
    %14 = arith.addf %12, %13 : vector<8x32xf32>
    %cst_6 = arith.constant dense<0.000000e+00> : vector<8xf32>
    %15 = vector.multi_reduction <add>, %14, %cst_6 [1] : vector<8x32xf32> to vector<8xf32>
    %16 = vector.shape_cast %15 : vector<8xf32> to vector<8x1xf32>
    %17 = arith.mulf %14, %0 : vector<8x32xf32>
    %cst_7 = arith.constant dense<0.000000e+00> : vector<8xf32>
    %18 = vector.multi_reduction <add>, %17, %cst_7 [1] : vector<8x32xf32> to vector<8xf32>
    %19 = vector.shape_cast %18 : vector<8xf32> to vector<8x1xf32>
    %20 = arith.mulf %10, %16 : vector<8x1xf32>
    %21 = arith.subf %20, %19 : vector<8x1xf32>
    %c0_8 = arith.constant 0 : index
    %c0_9 = arith.constant 0 : index
    %22 = vector.load %arg3[%c0_8, %c0_9] : memref<8x1xf32, #tpu.memory_space<vmem>>, vector<8x1xf32>
    tpu.vector_store %arg3[%c0_8, %c0_9], %21 {strides = array<i32>} : memref<8x1xf32, #tpu.memory_space<vmem>>, vector<8x1xf32>,
    return
  }
  func.func @transform_0(%arg0: i32) -> (i32, i32) {
    %c0_i32 = arith.constant 0 : i32
    %c0_i32_0 = arith.constant 0 : i32
    return %arg0, %c0_i32 : i32, i32
  }
  func.func @transform_1(%arg0: i32) -> (i32, i32) {
    %c0_i32 = arith.constant 0 : i32
    %c0_i32_0 = arith.constant 0 : i32
    return %arg0, %c0_i32 : i32, i32
  }
  func.func @transform_2(%arg0: i32) -> (i32, i32) {
    %c0_i32 = arith.constant 0 : i32
    %c0_i32_0 = arith.constant 0 : i32
    return %arg0, %c0_i32 : i32, i32
  }
}

</mosaic_0001>

<bundles_post_ra>
// kernel: tpu_custom_call.1
= control target key start
LH: loop header
LB: loop body
LE: loop exit
PB: predicated region body
PF: predicated region fallthrough
CT: control target
= control target key end

     0   :  { %7 = vsyncpa [#allocation3], 0  ;;  %s171_s0 = inlined_call_operand.hbm [shape: f32[8,32], index: 0, kind: input, shape index: {}]   ;;  %s172_s1 = inlined_call_operand.hbm [shape: f32[8,32], index: 1, kind: input, shape index: {}]   ;;  %s173_s2 = inlined_call_operand.vmem [shape: f32[8,1], index: 2, kind: output, shape index: {}]  }
   0x1   :  { %8 = vsyncpa [#allocation5], 0  ;;  %s123_s9 = smov [#allocation2]   ;;  %s124_s11 = smov [#allocation4]  }
   0x2   :  { %s15_s10 = sshll.u32 %s123_s9, 4  ;;  %s25_s12 = sshll.u32 %s124_s11, 4  ;;  %s16_s10 = int_to_ptr.vmem [resolvable:$true] %s15_s10  ;;  %s26_s12 = int_to_ptr.vmem [resolvable:$true] %s25_s12 }
   0x3   :  { %s75_s15 = scalar_lea.hbm %s171_s0, 128 }
   0x4   :  { %p76_p0 = scmp.ne.s32.totalorder %s171_s0, %s75_s15  ;;  %p79_p1 = scmp.lt.u32.totalorder %s75_s15, %s171_s0 }
   0x6   :  { %p81_p2 = pnand %p79_p1, %p76_p0 }
   0x8   :  { %84 = shalt.err (!%p81_p2)
}
   0x9   :  { %s85_s20 = scalar_lea.vmem %s16_s10, 128  ;;  %p90_p4 = scmp.lt.s32.totalorder %s16_s10, %s16_s10 }
   0xa   :  { %p86_p3 = scmp.ne.s32.totalorder %s16_s10, %s85_s20  ;;  %p91_p5 = scmp.lt.s32.totalorder %s85_s20, %s85_s20 }
   0xc   :  { %p92_p6 = por %p91_p5, %p90_p4 }
   0xe   :  { %p93_p7 = pnand %p92_p6, %p86_p3 }
  0x10   :  { %96 = shalt.err (!%p93_p7)
}
  0x11   :  { %18 = dma.hbm_to_vmem [thread:$0]  %s171_s0, 128, %s16_s10, [#allocation3]  }
  0x12   :  { %s97_s25 = scalar_lea.hbm %s172_s1, 128 }
  0x13   :  { %p98_p8 = scmp.ne.s32.totalorder %s172_s1, %s97_s25  ;;  %p101_p9 = scmp.lt.u32.totalorder %s97_s25, %s172_s1 }
  0x15   :  { %p103_p10 = pnand %p101_p9, %p98_p8 }
  0x17   :  { %106 = shalt.err (!%p103_p10)
}
  0x18   :  { %s107_s30 = scalar_lea.vmem %s26_s12, 128  ;;  %p112_p12 = scmp.lt.s32.totalorder %s26_s12, %s26_s12 }
  0x19   :  { %p108_p11 = scmp.ne.s32.totalorder %s26_s12, %s107_s30  ;;  %p113_p13 = scmp.lt.s32.totalorder %s107_s30, %s107_s30 }
  0x1b   :  { %p114_p0 = por %p113_p13, %p112_p12 }
  0x1d   :  { %p115_p1 = pnand %p114_p0, %p108_p11 }
  0x1f   :  { %118 = shalt.err (!%p115_p1)
}
  0x20   :  { %28 = dma.hbm_to_vmem [thread:$0]  %s172_s1, 128, %s26_s12, [#allocation5]  }
  0x21   :  { %119 = dma.done.wait [#allocation3], 128  }
  0x22   :  { %120 = vsyncadd [#allocation3], 4294967168 }
  0x23   :  { %121 = dma.done.wait [#allocation5], 128  }
  0x24   :  { %122 = vsyncadd [#allocation5], 4294967168  ;;  %vm37_vm0 = vcmask 261120   ;;  %v35_v0 = vld [vmem:[#allocation2] sm:$0xff]  ;;  %v36_v2 = vld [vmem:[#allocation4] sm:$0xff]  ;;  %vm61_vm1 = vcmask 7168  }
  0x25   :  { %v38_v1 = vsel %vm37_vm0, %v35_v0, -inf  ;;  %v50_v3 = vmul.f32 0.95, %v36_v2 }
  0x26   :  { %39 = vmax.xlane.f32.xlu0 %v38_v1 }
  0x27   :  { %v51_v4 = vadd.f32 0.0015625, %v50_v3 }
  0x29   :  { %v52_v5 = vsel %vm37_vm0, %v51_v4, 0.0  ;;  %v55_v6 = vmul.f32 %v51_v4, %v35_v0 }
  0x2a   :  { %53 = vadd.xlane.f32.xlu1 %v52_v5 }
  0x2b   :  { %v56_v7 = vsel %vm37_vm0, %v55_v6, 0.0 }
  0x2e   :  { %57 = vadd.xlane.f32.xlu1 %v56_v7 }
  0xb3   :  { %v40_v8 = vpop.xlane.xlu0 %39 }
  0xb4   :  { %v41_v9 = vsub.f32 %v35_v0, %v40_v8 }
  0xb6   :  { %v42_v10 = vmul.f32 1.442695, %v41_v9 }
  0xb7   :  { %v54_v14 = vpop.xlane.xlu1 %53 }
  0xb8   :  { %71 = vpow2.f32 %v42_v10 }
  0xbb   :  { %v58_v18 = vpop.xlane.xlu1 %57 }
  0xc2   :  { %v72_v11 = vpop.eup %71 }
  0xc3   :  { %v44_v12 = vsel %vm37_vm0, %v72_v11, 0.0 }
  0xc4   :  { %45 = vadd.xlane.f32.xlu0 %v44_v12 }
 0x151   :  { %v46_v13 = vpop.xlane.xlu0 %45 }
 0x152   :  { %73 = vlog2.f32 %v46_v13 }
 0x15c   :  { %v74_v15 = vpop.eup %73 }
 0x15d   :  { %v48_v16 = vmul.f32 0.6931472, %v74_v15 }
 0x15f   :  { %v49_v17 = vadd.f32 %v48_v16, %v40_v8 }
 0x161   :  { %v59_v19 = vmul.f32 %v54_v14, %v49_v17 }
 0x163   :  { %v60_v20 = vsub.f32 %v59_v19, %v58_v18 }
 0x165   :  { %62 = vst.msk [vmem:[%s173_s2] sm:$0xff] %vm61_vm1, %v60_v20 }
 0x166   :  { %67 = vsyncpa [#allocation3], 1 }
 0x167   :  { %68 = vsyncpa [#allocation5], 1 }

</bundles_post_ra>
